<compile_context>
chip_gen: v6e
topology: v6e:2x2x1
jax: 0.10.0
libtpu: 0.0.40
codegen_flags: <defaults>
</compile_context>

<pallas_src>
import functools

import jax
import jax.numpy as jnp
from jax import lax
from jax.experimental import pallas as pl
from jax.experimental.pallas import tpu as pltpu

LN_EPS = 1e-5


def patch_merging_kernel(Hh, Wh, C, x_ref, w_ref, b_ref, out_ref):
    # x_ref  : (Bb, Hh, 2, Wh, 2C)  wrapper's free reshape of (Bb, H*W, C)
    #            [:, i, 0, j, :] = [x(2i,  2j) | x(2i,  2j+1)] = [x0 | x2]
    #            [:, i, 1, j, :] = [x(2i+1,2j) | x(2i+1,2j+1)] = [x1 | x3]
    # w_ref  : (4C, 2C)  gamma-folded, row-permuted reduction weight
    # b_ref  : (1, 2C)   beta @ W^T  (folded LayerNorm bias term)
    # out_ref: (Bb, Hh*Wh, 2C)
    Bb = x_ref.shape[0]
    rows = Bb * Hh * Wh
    inv_c4 = 1.0 / (4 * C)

    x = x_ref[...]                                       # (Bb, Hh, 2, Wh, 2C)
    top = x[:, :, 0].reshape(rows, 2 * C)                # [x0 | x2]  major-axis slice
    bot = x[:, :, 1].reshape(rows, 2 * C)                # [x1 | x3]
    merged = jnp.concatenate([top, bot], axis=-1)        # (rows, 4C) = [x0|x2|x1|x3]

    # LayerNorm over the merged 4C channels (stats are permutation invariant).
    mu = jnp.sum(merged, axis=-1, keepdims=True) * inv_c4
    cen = merged - mu
    var = jnp.sum(cen * cen, axis=-1, keepdims=True) * inv_c4
    xn = cen * lax.rsqrt(var + LN_EPS)

    # gamma is folded into w_ref's rows and beta@W^T into b_ref, so the LN
    # affine costs one add over 2C lanes instead of mul+add over 4C lanes.
    y = jnp.dot(xn, w_ref[...], preferred_element_type=jnp.float32) + b_ref[...]
    out_ref[...] = y.reshape(Bb, Hh * Wh, 2 * C).astype(out_ref.dtype)


def patch_merging(x, gamma, beta, weight, H, W, block_b=None):
    """Fused Pallas PatchMerging.

    x      : (B, H*W, C) float32
    gamma  : (4C,) LayerNorm weight (torch channel order [x0|x1|x2|x3])
    beta   : (4C,) LayerNorm bias
    weight : (2C, 4C) torch nn.Linear weight (out, in), bias-free
    returns: (B, (H//2)*(W//2), 2C) float32
    """
    B, L, C = x.shape
    assert L == H * W and H % 2 == 0 and W % 2 == 0
    Hh, Wh = H // 2, W // 2
    Lout = Hh * Wh

    # Channel-block permutation: kernel merge order [x0|x2|x1|x3] vs torch
    # parameter order [x0|x1|x2|x3].
    ar = jnp.arange(C)
    perm = jnp.concatenate([ar, ar + 2 * C, ar + C, ar + 3 * C])

    wt = jnp.transpose(weight).astype(jnp.float32)                   # (4C, 2C)
    gamma_f = gamma.astype(jnp.float32)
    beta_f = beta.astype(jnp.float32)
    w_folded = (gamma_f[:, None] * wt)[perm, :]                      # (4C, 2C)
    bias = (beta_f @ wt).reshape(1, 2 * C)                           # (1, 2C)

    # Free reshape (contiguous view): (B, H*W, C) -> (B, H//2, 2, W//2, 2C).
    xr = x.reshape(B, Hh, 2, Wh, 2 * C)

    # Batch blocking: target ~512 rows per step for the MXU M dim, but keep at
    # least 2 grid steps when possible so the "parallel" axis spans both v7x
    # TensorCores.
    if block_b is None:
        block_b = max(1, 512 // max(Lout, 1))
        if B >= 2:
            block_b = min(block_b, B // 2)
    block_b = max(1, min(block_b, B))
    while B % block_b:
        block_b -= 1
    grid_b = B // block_b

    kernel = functools.partial(patch_merging_kernel, Hh, Wh, C)
    return pl.pallas_call(
        kernel,
        out_shape=jax.ShapeDtypeStruct((B, Lout, 2 * C), jnp.float32),
        grid_spec=pltpu.PrefetchScalarGridSpec(
            num_scalar_prefetch=0,
            grid=(grid_b,),
            in_specs=[
                pl.BlockSpec((block_b, Hh, 2, Wh, 2 * C),
                             lambda b: (b, 0, 0, 0, 0)),
                pl.BlockSpec((4 * C, 2 * C), lambda b: (0, 0)),
                pl.BlockSpec((1, 2 * C), lambda b: (0, 0)),
            ],
            out_specs=pl.BlockSpec((block_b, Lout, 2 * C),
                                   lambda b: (b, 0, 0)),
        ),
        compiler_params=pltpu.CompilerParams(
            dimension_semantics=("parallel",)),
    )(xr, w_folded, bias)


# ------------------- plain-JAX reference (exact torch semantics) -------------------

def patch_merging_ref(x, gamma, beta, weight, H, W):
    B, L, C = x.shape
    xv = x.reshape(B, H, W, C)
    x0 = xv[:, 0::2, 0::2, :]
    x1 = xv[:, 1::2, 0::2, :]
    x2 = xv[:, 0::2, 1::2, :]
    x3 = xv[:, 1::2, 1::2, :]
    xc = jnp.concatenate([x0, x1, x2, x3], axis=-1).reshape(B, -1, 4 * C)
    mu = xc.mean(-1, keepdims=True)
    var = jnp.square(xc - mu).mean(-1, keepdims=True)
    xn = (xc - mu) * lax.rsqrt(var + LN_EPS) * gamma + beta
    return xn @ weight.T


if __name__ == "__main__":
    B = 2
    H = W = 16                 # input_resolution
    dim = 64                   # C  (-> 4C = 256, 2C = 128: lane-dense)
    L = H * W

    key = jax.random.PRNGKey(0)
    kx, kg, kb, kw = jax.random.split(key, 4)
    x = jax.random.normal(kx, (B, L, dim), jnp.float32)
    gamma = 1.0 + 0.1 * jax.random.normal(kg, (4 * dim,), jnp.float32)
    beta = 0.1 * jax.random.normal(kb, (4 * dim,), jnp.float32)
    weight = 0.05 * jax.random.normal(kw, (2 * dim, 4 * dim), jnp.float32)

    out = patch_merging(x, gamma, beta, weight, H, W)
    out = jax.block_until_ready(out)

    ref = patch_merging_ref(x, gamma, beta, weight, H, W)
    assert out.shape == (B, (H // 2) * (W // 2), 2 * dim)
    max_err = float(jnp.max(jnp.abs(out - ref)))
    if not jnp.allclose(out, ref, atol=1e-3, rtol=1e-3):
        raise AssertionError(f"kernel mismatch vs reference, max abs err = {max_err}")
    print("KERNEL_OK")
</pallas_src>

<mosaic_0001>
module attributes {stable_mosaic.version = 11 : i64} {
  func.func @patch_merging_kernel(%arg0: i32, %arg1: memref<1x8x2x8x128xf32, #tpu.memory_space<vmem>>, %arg2: memref<256x128xf32, #tpu.memory_space<vmem>>, %arg3: memref<1x128xf32, #tpu.memory_space<vmem>>, %arg4: memref<1x64x128xf32, #tpu.memory_space<vmem>>) attributes {dimension_semantics = [#tpu.dimension_semantics<parallel>], iteration_bounds = array<i64: 2>, scalar_prefetch = 0 : i64, scratch_operands = 0 : i64, tpu.core_type = #tpu.core_type<tc>, window_params = [{transform_indices = @transform_0, window_bounds = array<i64: 1, 8, 2, 8, 128>}, {pipeline_mode = #tpu.pipeline_mode<synchronous>, transform_indices = @transform_1, window_bounds = array<i64: 256, 128>}, {pipeline_mode = #tpu.pipeline_mode<synchronous>, transform_indices = @transform_2, window_bounds = array<i64: 1, 128>}, {transform_indices = @transform_3, window_bounds = array<i64: 1, 64, 128>}]} {
    %c0 = arith.constant 0 : index
    %c0_0 = arith.constant 0 : index
    %c0_1 = arith.constant 0 : index
    %c0_2 = arith.constant 0 : index
    %c0_3 = arith.constant 0 : index
    %0 = vector.load %arg1[%c0, %c0_0, %c0_1, %c0_2, %c0_3] : memref<1x8x2x8x128xf32, #tpu.memory_space<vmem>>, vector<1x8x2x8x128xf32>
    %1 = vector.extract_strided_slice %0 {offsets = [0, 0, 0, 0, 0], sizes = [1, 8, 1, 8, 128], strides = [1, 1, 1, 1, 1]} : vector<1x8x2x8x128xf32> to vector<1x8x1x8x128xf32>
    %2 = vector.shape_cast %1 : vector<1x8x1x8x128xf32> to vector<1x8x8x128xf32>
    %3 = vector.shape_cast %2 : vector<1x8x8x128xf32> to vector<64x128xf32>
    %4 = vector.extract_strided_slice %0 {offsets = [0, 0, 1, 0, 0], sizes = [1, 8, 1, 8, 128], strides = [1, 1, 1, 1, 1]} : vector<1x8x2x8x128xf32> to vector<1x8x1x8x128xf32>
    %5 = vector.shape_cast %4 : vector<1x8x1x8x128xf32> to vector<1x8x8x128xf32>
    %6 = vector.shape_cast %5 : vector<1x8x8x128xf32> to vector<64x128xf32>
    %7 = tpu.concatenate %3, %6 in 1 : vector<64x128xf32>, vector<64x128xf32> -> vector<64x256xf32>
    %cst = arith.constant dense<0.000000e+00> : vector<64xf32>
    %8 = vector.multi_reduction <add>, %7, %cst [1] : vector<64x256xf32> to vector<64xf32>
    %9 = vector.shape_cast %8 : vector<64xf32> to vector<64x1xf32>
    %cst_4 = arith.constant 3.906250e-03 : f32
    %10 = vector.broadcast %cst_4 : f32 to vector<64x1xf32>
    %11 = arith.mulf %9, %10 : vector<64x1xf32>
    %12 = vector.broadcast %11 : vector<64x1xf32> to vector<64x256xf32>
    %13 = arith.subf %7, %12 : vector<64x256xf32>
    %14 = arith.mulf %13, %13 : vector<64x256xf32>
    %cst_5 = arith.constant dense<0.000000e+00> : vector<64xf32>
    %15 = vector.multi_reduction <add>, %14, %cst_5 [1] : vector<64x256xf32> to vector<64xf32>
    %16 = vector.shape_cast %15 : vector<64xf32> to vector<64x1xf32>
    %cst_6 = arith.constant 3.906250e-03 : f32
    %17 = vector.broadcast %cst_6 : f32 to vector<64x1xf32>
    %18 = arith.mulf %16, %17 : vector<64x1xf32>
    %cst_7 = arith.constant 9.99999974E-6 : f32
    %19 = vector.broadcast %cst_7 : f32 to vector<64x1xf32>
    %20 = arith.addf %18, %19 : vector<64x1xf32>
    %21 = math.rsqrt %20 : vector<64x1xf32>
    %22 = vector.broadcast %21 : vector<64x1xf32> to vector<64x256xf32>
    %23 = arith.mulf %13, %22 : vector<64x256xf32>
    %c0_8 = arith.constant 0 : index
    %c0_9 = arith.constant 0 : index
    %24 = vector.load %arg2[%c0_8, %c0_9] : memref<256x128xf32, #tpu.memory_space<vmem>>, vector<256x128xf32>
    %cst_10 = arith.constant dense<0.000000e+00> : vector<64x128xf32>
    %25 = tpu.matmul %23, %24, %cst_10 {dimension_numbers = #tpu.dot_dimension_numbers<[1], [0], [0], [1], [0, 0, 1, 1], [], []>} : vector<64x256xf32>, vector<256x128xf32>, vector<64x128xf32> -> vector<64x128xf32>
    %c0_11 = arith.constant 0 : index
    %c0_12 = arith.constant 0 : index
    %26 = vector.load %arg3[%c0_11, %c0_12] : memref<1x128xf32, #tpu.memory_space<vmem>>, vector<1x128xf32>
    %27 = vector.broadcast %26 : vector<1x128xf32> to vector<64x128xf32>
    %28 = arith.addf %25, %27 : vector<64x128xf32>
    %29 = vector.shape_cast %28 : vector<64x128xf32> to vector<1x64x128xf32>
    %c0_13 = arith.constant 0 : index
    %c0_14 = arith.constant 0 : index
    %c0_15 = arith.constant 0 : index
    %30 = vector.load %arg4[%c0_13, %c0_14, %c0_15] : memref<1x64x128xf32, #tpu.memory_space<vmem>>, vector<1x64x128xf32>
    tpu.vector_store %arg4[%c0_13, %c0_14, %c0_15], %29 {strides = array<i32>} : memref<1x64x128xf32, #tpu.memory_space<vmem>>, vector<1x64x128xf32>,
    return
  }
  func.func @transform_0(%arg0: i32) -> (i32, i32, i32, i32, i32) {
    %c0_i32 = arith.constant 0 : i32
    %c0_i32_0 = arith.constant 0 : i32
    %c0_i32_1 = arith.constant 0 : i32
    %c0_i32_2 = arith.constant 0 : i32
    %c0_i32_3 = arith.constant 0 : i32
    return %arg0, %c0_i32, %c0_i32_0, %c0_i32_1, %c0_i32_2 : i32, i32, i32, i32, i32
  }
  func.func @transform_1(%arg0: i32) -> (i32, i32) {
    %c0_i32 = arith.constant 0 : i32
    %c0_i32_0 = arith.constant 0 : i32
    %c0_i32_1 = arith.constant 0 : i32
    return %c0_i32, %c0_i32_0 : i32, i32
  }
  func.func @transform_2(%arg0: i32) -> (i32, i32) {
    %c0_i32 = arith.constant 0 : i32
    %c0_i32_0 = arith.constant 0 : i32
    %c0_i32_1 = arith.constant 0 : i32
    return %c0_i32, %c0_i32_0 : i32, i32
  }
  func.func @transform_3(%arg0: i32) -> (i32, i32, i32) {
    %c0_i32 = arith.constant 0 : i32
    %c0_i32_0 = arith.constant 0 : i32
    %c0_i32_1 = arith.constant 0 : i32
    return %arg0, %c0_i32, %c0_i32_0 : i32, i32, i32
  }
}

</mosaic_0001>

<bundles_post_ra>
// kernel: tpu_custom_call.1
= control target key start
LH: loop header
LB: loop body
LE: loop exit
PB: predicated region body
PF: predicated region fallthrough
CT: control target
= control target key end

     0   :  { %8 = vsyncpa [#allocation3], 0  ;;  %s1274_s0 = inlined_call_operand.hbm [shape: f32[2,8,2,8,128], index: 0, kind: input, shape index: {}]   ;;  %s1275_s1 = inlined_call_operand.hbm [shape: f32[256,128], index: 1, kind: input, shape index: {}]   ;;  %s1276_s2 = inlined_call_operand.vmem [shape: f32[1,128], index: 2, kind: input, shape index: {}]   ;;  %s1277_s3 = inlined_call_operand.hbm [shape: f32[2,64,128], index: 3, kind: output, shape index: {}]  }
   0x1   :  { %10 = vsyncpa [#allocation3 + $0x1], 0 }
   0x2   :  { %11 = vsyncpa [#allocation6], 0 }
   0x3   :  { %12 = vsyncpa [#allocation4], 0 }
   0x4   :  { %14 = vsyncpa [#allocation4 + $0x1], 0  ;;  %s932_s12 = smov 0   ;;  %s934_s13 = smov 0  }
   0x5   :  { %s936_s14 = smov 0   ;;  %s938_s15 = smov 0  }
   0x6 LB: > { %s953_s16 = sadd.s32 4294967295, %s903_s15   ;;  %s597_s17 = sadd.s32 4294967294, %s903_s15   ;;  %s903_s15 = sphi %s938_s15, %s1299_s15   ;;  %s899_s14 = sphi %s936_s14, %s1298_s14   ;;  %s895_s13 = sphi %s934_s13, %s1297_s13   ;;  %s891_s12 = sphi %s932_s12, %s1296_s12  }
   0x7   : > { %p40_p0 = scmp.ne.s32.totalorder %s895_s13, %s891_s12  ;;  %p1278_p1 = scmp.eq.s32.totalorder %s953_s16, 0 }
   0x8   : > { %p112_p3 = scmp.eq.s32.totalorder %s597_s17, 1  ;;  %p598_p5 = scmp.ge.s32.totalorder %s903_s15, 1 }
   0x9   : > { %p962_p4 = por %p1278_p1, %p40_p0  ;;  %p119_p7 = scmp.lt.s32.totalorder %s903_s15, 3 }
   0xa   : > { %p967_p6 = por %p112_p3, %p40_p0  ;;  %s905_s21 = smov [#allocation5]  }
   0xb   : > { %s1282_s18 = scalar_select %p962_p4, 1, 0 }
   0xc   : > { %s1283_s19 = scalar_select %p967_p6, 1, 0 }
   0xd   : > { %p972_p8 = pnand %p598_p5, %p119_p7  ;;  %s131_s22 = sshll.u32 %s905_s21, 4  ;;  %s132_s22 = int_to_ptr.vmem [resolvable:$true] %s131_s22 }
   0xe   : > { %s986_s24 = sadd.s32 1, %s903_s15   ;;  %s27_s25 = sadd.s32 1, %s899_s14 }
   0xf   : > { %s1284_s20 = scalar_select %p972_p8, 1, 0 }
  0x10   : > { %p712_p9 = pneg %p972_p8  ;;  %s24_s26 = ssub.s32 %s903_s15, %s986_s24 }
  0x11   : > { %s792_s27 = scalar_lea.vmem %s132_s22, 4096  ;;  %p800_p5 = scmp.lt.s32.totalorder %s132_s22, %s132_s22 }
  0x12   : > { %p981_p11 = pnand %p712_p9, %p1278_p1  ;;  %p793_p13 = scmp.ne.s32.totalorder %s132_s22, %s792_s27 }
  0x13   : > { %p801_p7 = scmp.lt.s32.totalorder %s792_s27, %s792_s27 }
  0x14   : > { %p783_p12 = pneg %p981_p11 }
  0x15   : > { %p802_p10 = por %p801_p7, %p800_p5 }
  0x16   : > { %p795_p0 = pnand %p793_p13, %p783_p12 }
  0x18   : > { %p796_p3 = pneg %p795_p0 }
  0x1a   : > { %p803_p2 = pnand %p802_p10, %p796_p3 }
  0x1c   : > { %806 = shalt.err (!%p803_p2)
}
  0x1d   : > { %s906_s28 = smov 128   ;;  %s907_s29 = smov 8  }
  0x1e   : > { %715 = dma.hbm_to_vmem [thread:$0]  (!%p981_p11), %s1275_s1, 4096, %s132_s22, [#allocation6], %s906_s28, %s906_s28, %s907_s29  }
  0x1f   : > { %p25_p2 = scmp.eq.s32.totalorder %s24_s26, 0  ;;  %p34_p9 = scmp.ne.s32.totalorder %s899_s14, %s895_s13 }
  0x20   : > { %p35_p10 = scmp.eq.s32.totalorder %s903_s15, 0  ;;  %p725_p12 = scmp.lt.s32.totalorder %s903_s15, 2 }
  0x21   : > { %s1006_s5 = scalar_select %p25_p2, %s899_s14, %s27_s25  }
  0x22   : > { %p36_p13 = por %p35_p10, %p34_p9  ;;  %p1286_p0 = scmp.eq.s32.totalorder %s953_s16, 1 }
  0x23   : > { %s148_s7 = sand.u32 1, %s899_s14   ;;  %s614_s8 = sshll.u32 %s903_s15, 11 }
  0x24   : > { %p1010_p3 = por %p1286_p0, %p34_p9  ;;  %s601_s9 = sshll.u32 %s148_s7, 7 }
  0x25   : > { %s1019_s17 = scalar_lea.hbm %s1274_s0, %s614_s8  ;;  %s152_s21 = scalar_lea.vmem [#allocation2], %s601_s9 }
  0x26   : > { %s1287_s6 = scalar_select %p1010_p3, 1, 0 }
  0x27   : > { %s159_s22 = sshll.u32 %s152_s21, 4  ;;  %p1021_p11 = pnand %p725_p12, %p36_p13  ;;  %s1025_s22 = int_to_ptr.vmem [resolvable:$true] %s159_s22 }
  0x28   : > { %s1027_s25 = scalar_lea.sflag [#allocation3], %s148_s7  ;;  %s807_s26 = scalar_lea.hbm %s1019_s17, 2048 }
  0x29   : > { %p808_p5 = scmp.ne.s32.totalorder %s1019_s17, %s807_s26  ;;  %p809_p7 = pneg %p1021_p11 }
  0x2a   : > { %s812_s4 = scalar_lea.hbm %s1274_s0, 4096  ;;  %p813_p10 = scmp.lt.s32.totalorder %s1019_s17, %s1274_s0 }
  0x2b   : > { %p810_p2 = pnand %p809_p7, %p808_p5  ;;  %p814_p12 = scmp.lt.s32.totalorder %s812_s4, %s807_s26 }
  0x2d   : > { %p811_p9 = pneg %p810_p2  ;;  %p815_p13 = por %p814_p12, %p813_p10 }
  0x2f   : > { %p816_p0 = pnand %p815_p13, %p811_p9 }
  0x31   : > { %819 = shalt.err (!%p816_p0)
}
  0x32   : > { %s820_s7 = scalar_lea.vmem %s1025_s22, 2048  ;;  %s908_s10 = smov [#allocation2]  }
  0x33   : > { %p821_p1 = scmp.ne.s32.totalorder %s1025_s22, %s820_s7  ;;  %s825_s11 = sshll.u32 %s908_s10, 4  ;;  %s826_s11 = int_to_ptr.vmem [resolvable:$false] %s825_s11 }
  0x34   : > { %s827_s21 = scalar_lea.vmem %s826_s11, 4096  ;;  %p828_p2 = scmp.lt.s32.totalorder %s1025_s22, %s826_s11 }
  0x35   : > { %p823_p6 = pnand %p821_p1, %p809_p7  ;;  %p829_p3 = scmp.lt.s32.totalorder %s827_s21, %s820_s7 }
  0x37   : > { %p824_p5 = pneg %p823_p6  ;;  %p830_p4 = por %p829_p3, %p828_p2 }
  0x39   : > { %p831_p8 = pnand %p830_p4, %p824_p5 }
  0x3b   : > { %834 = shalt.err (!%p831_p8)
}
  0x3c   : > { %719 = dma.hbm_to_vmem [thread:$0]  (!%p1021_p11), %s1019_s17, 2048, %s1025_s22, %s1027_s25, %s906_s28, %s906_s28, %s907_s29  }
  0x3d   : > { %p1289_p1 = scmp.ne.s32.totalorder %s1284_s20, 0 }
  0x3e   : > { %s1054_s26 = sand.u32 (!%p1289_p1), 1, %s895_s13   ;;  %p1290_p4 = scmp.ne.s32.totalorder (!%p1289_p1), %s1282_s18, 0 }
  0x3f   : > { %171 = sbr.rel (%p1289_p1) target bundleno = 609 (0x261), region = 32  ;;  %s605_s27 = sshll.u32 (!%p1289_p1), %s1054_s26, 7 }
  0x40   : > { %s174_s30 = scalar_lea.sflag (!%p1289_p1), [#allocation3], %s1054_s26  ;;  %s177_s4 = scalar_lea.vmem (!%p1289_p1), [#allocation2], %s605_s27 }
  0x44   : > { %878 = dma.done.wait (%p1290_p4), %s174_s30, 2048  }
  0x45   : > { %880 = vsyncadd (%p1290_p4), %s174_s30, 4294965248  ;;  %p1291_p6 = scmp.eq.s32.totalorder %s953_s16, 0 }
  0x47   : > { %882 = dma.done.wait (%p1291_p6), [#allocation6], 4096   ;;  %p1292_p8 = pmov %p1291_p6 }
  0x48   : > { %v1066_v0 = vld [vmem:[%s177_s4] sm:$0xff]  ;;  %v1068_v1 = vld [vmem:[%s177_s4 + $0x8] sm:$0xff]  ;;  %v1070_v2 = vld [vmem:[%s177_s4 + $0x10] sm:$0xff]  ;;  %s607_s18 = sshll.u32 %s1054_s26, 6  ;;  %s615_s22 = sshll.u32 %s953_s16, 10 }
  0x49   : > { %884 = vsyncadd (%p1292_p8), [#allocation6], 4294963200  ;;  %v220_v3 = vadd.f32 %v1068_v1, %v1066_v0  ;;  %v1074_v4 = vld [vmem:[%s177_s4 + $0x18] sm:$0xff]  ;;  %v1076_v5 = vld [vmem:[%s177_s4 + $0x40] sm:$0xff]  ;;  %s1214_s29 = scalar_lea.vmem [#allocation7], %s607_s18  ;;  %s1230_s8 = scalar_lea.hbm %s1277_s3, %s615_s22 }
  0x4a   : > { %v1078_v6 = vld [vmem:[%s177_s4 + $0x48] sm:$0xff]  ;;  %v223_v7 = vadd.f32 %v1074_v4, %v1070_v2  ;;  %v1082_v8 = vld [vmem:[%s177_s4 + $0x50] sm:$0xff]  ;;  %v1084_v9 = vld [vmem:[%s177_s4 + $0x58] sm:$0xff]  ;;  %s514_s17 = sshll.u32 %s1214_s29, 4  ;;  %s501_s9 = scalar_lea.sflag [#allocation4], %s1054_s26  ;;  %s1223_s17 = int_to_ptr.vmem [resolvable:$true] %s514_s17 }
  0x4b   : > { %221 = vadd.xlane.f32.xlu0 %v220_v3  ;;  %v232_v10 = vadd.f32 %v1078_v6, %v1076_v5  ;;  %v235_v11 = vadd.f32 %v1084_v9, %v1082_v8  ;;  %v1090_v12 = vld [vmem:[%s177_s4 + $0x20] sm:$0xff]  ;;  %v1092_v13 = vld [vmem:[%s177_s4 + $0x28] sm:$0xff]  ;;  %v1102_v18 = vld [vmem:[%s177_s4 + $0x30] sm:$0xff]  ;;  %s835_s7 = scalar_lea.vmem %s1223_s17, 1024  ;;  %p1293_p11 = scmp.ne.s32.totalorder %s1287_s6, 0 }
  0x4c   : > { %224 = vadd.xlane.f32.xlu1 %v223_v7  ;;  %v1094_v14 = vld [vmem:[%s177_s4 + $0x60] sm:$0xff]  ;;  %v1096_v15 = vld [vmem:[%s177_s4 + $0x68] sm:$0xff]  ;;  %v226_v16 = vadd.f32 %v1092_v13, %v1090_v12  ;;  %v1104_v19 = vld [vmem:[%s177_s4 + $0x38] sm:$0xff]  ;;  %p836_p3 = scmp.ne.s32.totalorder %s1223_s17, %s835_s7  ;;  %s909_s16 = smov [#allocation7]  }
  0x4d   : > { %v238_v17 = vadd.f32 %v1096_v15, %v1094_v14  ;;  %v1106_v20 = vld [vmem:[%s177_s4 + $0x70] sm:$0xff]  ;;  %v1108_v21 = vld [vmem:[%s177_s4 + $0x78] sm:$0xff]  ;;  %v229_v22 = vadd.f32 %v1104_v19, %v1102_v18  ;;  %v377_v28 = vld [vmem:[#allocation5 + $0xe8] sm:$0xff]  ;;  %s839_s10 = sshll.u32 %s909_s16, 4  ;;  %s840_s10 = int_to_ptr.vmem [resolvable:$false] %s839_s10 }
  0x4e   : > { %v241_v23 = vadd.f32 %v1108_v21, %v1106_v20  ;;  %v379_v24 = vld [vmem:[#allocation5 + $0xf8] sm:$0xff]  ;;  %v378_v26 = vld [vmem:[#allocation5 + $0xf0] sm:$0xff]  ;;  %v361_v29 = vld [vmem:[#allocation5 + $0x68] sm:$0xff]  ;;  %p837_p7 = pnand %p836_p3, %p1293_p11  ;;  %s841_s11 = scalar_lea.vmem %s840_s10, 2048 }
  0x4f   : > { %233 = vadd.xlane.f32.xlu0 %v232_v10  ;;  %v363_v25 = vld [vmem:[#allocation5 + $0x78] sm:$0xff]  ;;  %616 = vmatprep.subr.mxu0 %v379_v24  ;;  %v362_v27 = vld [vmem:[#allocation5 + $0x70] sm:$0xff]  ;;  %v376_v30 = vld [vmem:[#allocation5 + $0xe0] sm:$0xff]  ;;  %p842_p10 = scmp.lt.s32.totalorder %s1223_s17, %s840_s10  ;;  %p843_p12 = scmp.lt.s32.totalorder %s841_s11, %s835_s7 }
  0x50   : > { %236 = vadd.xlane.f32.xlu1 %v235_v11  ;;  %672 = vmatprep.subr.mxu1 %v379_v24  ;;  %v360_v31 = vld [vmem:[#allocation5 + $0x60] sm:$0xff]  ;;  %v375_v32 = vld [vmem:[#allocation5 + $0xd8] sm:$0xff]  ;;  %v374_v34 = vld [vmem:[#allocation5 + $0xd0] sm:$0xff]  ;;  %p838_p9 = pneg %p837_p7 }
  0x51   : > { %617 = vmatpush3.msra.mxu0 %v363_v25  ;;  %688 = vmatpush3.msra.mxu1 %v363_v25  ;;  %v359_v33 = vld [vmem:[#allocation5 + $0x58] sm:$0xff]  ;;  %p844_p13 = por %p843_p12, %p842_p10 }
  0x52   : > { %618 = vmatprep.subr.mxu0 %v378_v26  ;;  %673 = vmatprep.subr.mxu1 %v378_v26 }
  0x53   : > { %227 = vadd.xlane.f32.xlu0 %v226_v16  ;;  %619 = vmatpush3.msra.mxu0 %v362_v27  ;;  %p845_p0 = pnand %p844_p13, %p838_p9 }
  0x54   : > { %239 = vadd.xlane.f32.xlu1 %v238_v17  ;;  %689 = vmatpush3.msra.mxu1 %v362_v27 }
  0x55   : > { %620 = vmatprep.subr.mxu0 %v377_v28  ;;  %674 = vmatprep.subr.mxu1 %v377_v28  ;;  %v357_v28 = vld [vmem:[#allocation5 + $0x48] sm:$0xff] }
  0x56   : > { %621 = vmatpush3.msra.mxu0 %v361_v29  ;;  %690 = vmatpush3.msra.mxu1 %v361_v29 }
  0x57   : > { %230 = vadd.xlane.f32.xlu0 %v229_v22  ;;  %622 = vmatprep.subr.mxu0 %v376_v30 }
  0x58   : > { %242 = vadd.xlane.f32.xlu1 %v241_v23  ;;  %675 = vmatprep.subr.mxu1 %v376_v30  ;;  %v372_v30 = vld [vmem:[#allocation5 + $0xc0] sm:$0xff] }
  0x59   : > { %623 = vmatpush3.msra.mxu0 %v360_v31  ;;  %691 = vmatpush3.msra.mxu1 %v360_v31  ;;  %v356_v31 = vld [vmem:[#allocation5 + $0x40] sm:$0xff] }
  0x5a   : > { %624 = vmatprep.subr.mxu0 %v375_v32  ;;  %676 = vmatprep.subr.mxu1 %v375_v32  ;;  %v371_v32 = vld [vmem:[#allocation5 + $0xb8] sm:$0xff] }
  0x5b   : > { %625 = vmatpush3.msra.mxu0 %v359_v33  ;;  %692 = vmatpush3.msra.mxu1 %v359_v33  ;;  %v355_v33 = vld [vmem:[#allocation5 + $0x38] sm:$0xff] }
  0x5c   : > { %626 = vmatprep.subr.mxu0 %v374_v34  ;;  %677 = vmatprep.subr.mxu1 %v374_v34  ;;  %v370_v34 = vld [vmem:[#allocation5 + $0xb0] sm:$0xff] }
  0xd4   : > { %v222_v35 = vpop.xlane.xlu0 %221 }
  0xd5   : > { %v244_v36 = vmul.f32 0.00390625, %v222_v35  ;;  %v225_v37 = vpop.xlane.xlu1 %224  ;;  %v354_v35 = vld [vmem:[#allocation5 + $0x30] sm:$0xff] }
  0xd6   : > { %v245_v38 = vmul.f32 0.00390625, %v225_v37  ;;  %v353_v37 = vld [vmem:[#allocation5 + $0x28] sm:$0xff] }
  0xd7   : > { %v1115_v39 = vsub.f32 %v1066_v0, %v244_v36  ;;  %v1118_v40 = vsub.f32 %v1068_v1, %v244_v36  ;;  %v369_v36 = vld [vmem:[#allocation5 + $0xa8] sm:$0xff] }
  0xd8   : > { %v1121_v41 = vsub.f32 %v1070_v2, %v245_v38  ;;  %v1124_v42 = vsub.f32 %v1074_v4, %v245_v38  ;;  %v234_v43 = vpop.xlane.xlu0 %233  ;;  %v368_v38 = vld [vmem:[#allocation5 + $0xa0] sm:$0xff] }
  0xd9   : > { %v248_v44 = vmul.f32 0.00390625, %v234_v43  ;;  %v237_v45 = vpop.xlane.xlu1 %236  ;;  %v268_v46 = vmul.f32 %v1115_v39, %v1115_v39  ;;  %v269_v47 = vmul.f32 %v1118_v40, %v1118_v40  ;;  %v352_v43 = vld [vmem:[#allocation5 + $0x20] sm:$0xff] }
  0xda   : > { %v249_v48 = vmul.f32 0.00390625, %v237_v45  ;;  %v270_v49 = vmul.f32 %v1121_v41, %v1121_v41  ;;  %v271_v50 = vmul.f32 %v1124_v42, %v1124_v42  ;;  %v351_v45 = vld [vmem:[#allocation5 + $0x18] sm:$0xff] }
  0xdb   : > { %v1135_v51 = vsub.f32 %v1076_v5, %v248_v44  ;;  %v1138_v52 = vsub.f32 %v1078_v6, %v248_v44  ;;  %v284_v53 = vadd.f32 %v269_v47, %v268_v46  ;;  %v367_v44 = vld [vmem:[#allocation5 + $0x98] sm:$0xff]  ;;  %v366_v46 = vld [vmem:[#allocation5 + $0x90] sm:$0xff] }
  0xdc   : > { %v1141_v54 = vsub.f32 %v1082_v8, %v249_v48  ;;  %v1144_v55 = vsub.f32 %v1084_v9, %v249_v48  ;;  %v228_v56 = vpop.xlane.xlu0 %227  ;;  %v287_v59 = vadd.f32 %v271_v50, %v270_v49  ;;  %v350_v47 = vld [vmem:[#allocation5 + $0x10] sm:$0xff]  ;;  %v365_v48 = vld [vmem:[#allocation5 + $0x88] sm:$0xff]  ;;  %v364_v50 = vld [vmem:[#allocation5 + $0x80] sm:$0xff] }
  0xdd   : > { %v246_v57 = vmul.f32 0.00390625, %v228_v56  ;;  %285 = vadd.xlane.f32.xlu0 %v284_v53  ;;  %v240_v58 = vpop.xlane.xlu1 %239  ;;  %v276_v60 = vmul.f32 %v1135_v51, %v1135_v51  ;;  %v277_v61 = vmul.f32 %v1138_v52, %v1138_v52  ;;  %v349_v49 = vld [vmem:[#allocation5 + $0x8] sm:$0xff]  ;;  %v348_v53 = vld [vmem:[#allocation5] sm:$0xff] }
  0xde   : > { %v250_v62 = vmul.f32 0.00390625, %v240_v58  ;;  %v278_v63 = vmul.f32 %v1141_v54, %v1141_v54  ;;  %v279_v0 = vmul.f32 %v1144_v55, %v1144_v55 }
  0xdf   : > { %v1155_v1 = vsub.f32 %v1090_v12, %v246_v57  ;;  %v1158_v2 = vsub.f32 %v1092_v13, %v246_v57  ;;  %v296_v3 = vadd.f32 %v277_v61, %v276_v60 }
  0xe0   : > { %v1161_v4 = vsub.f32 %v1094_v14, %v250_v62  ;;  %v1164_v5 = vsub.f32 %v1096_v15, %v250_v62  ;;  %v231_v6 = vpop.xlane.xlu0 %230  ;;  %v299_v9 = vadd.f32 %v279_v0, %v278_v63 }
  0xe1   : > { %v247_v7 = vmul.f32 0.00390625, %v231_v6  ;;  %288 = vadd.xlane.f32.xlu0 %v287_v59  ;;  %297 = vadd.xlane.f32.xlu1 %v296_v3  ;;  %v243_v8 = vpop.xlane.xlu1 %242  ;;  %v272_v10 = vmul.f32 %v1155_v1, %v1155_v1  ;;  %v273_v11 = vmul.f32 %v1158_v2, %v1158_v2 }
  0xe2   : > { %v251_v12 = vmul.f32 0.00390625, %v243_v8  ;;  %v280_v13 = vmul.f32 %v1161_v4, %v1161_v4  ;;  %v281_v14 = vmul.f32 %v1164_v5, %v1164_v5 }
  0xe3   : > { %v1175_v15 = vsub.f32 %v1102_v18, %v247_v7  ;;  %v1178_v16 = vsub.f32 %v1104_v19, %v247_v7  ;;  %v290_v17 = vadd.f32 %v273_v11, %v272_v10 }
  0xe4   : > { %v1181_v22 = vsub.f32 %v1106_v20, %v251_v12  ;;  %v1184_v23 = vsub.f32 %v1108_v21, %v251_v12  ;;  %v302_v24 = vadd.f32 %v281_v14, %v280_v13  ;;  %v358_v20 = vld [vmem:[#allocation5 + $0x50] sm:$0xff]  ;;  %v373_v21 = vld [vmem:[#allocation5 + $0xc8] sm:$0xff] }
  0xe5   : > { %300 = vadd.xlane.f32.xlu1 %v299_v9  ;;  %291 = vadd.xlane.f32.xlu0 %v290_v17  ;;  %v274_v25 = vmul.f32 %v1175_v15, %v1175_v15  ;;  %v275_v18 = vmul.f32 %v1178_v16, %v1178_v16 }
  0xe6   : > { %v282_v19 = vmul.f32 %v1181_v22, %v1181_v22  ;;  %v283_v26 = vmul.f32 %v1184_v23, %v1184_v23  ;;  %627 = vmatpush3.msra.mxu0 %v358_v20  ;;  %693 = vmatpush3.msra.mxu1 %v358_v20 }
  0xe7   : > { %v293_v27 = vadd.f32 %v275_v18, %v274_v25  ;;  %628 = vmatprep.subr.mxu0 %v373_v21  ;;  %678 = vmatprep.subr.mxu1 %v373_v21 }
  0xe8   : > { %v305_v29 = vadd.f32 %v283_v26, %v282_v19  ;;  %629 = vmatpush3.msra.mxu0 %v357_v28  ;;  %694 = vmatpush3.msra.mxu1 %v357_v28 }
  0xe9   : > { %303 = vadd.xlane.f32.xlu1 %v302_v24  ;;  %294 = vadd.xlane.f32.xlu0 %v293_v27 }
  0xea   : > { %630 = vmatprep.subr.mxu0 %v372_v30  ;;  %679 = vmatprep.subr.mxu1 %v372_v30 }
  0xeb   : > { %631 = vmatpush3.msra.mxu0 %v356_v31  ;;  %695 = vmatpush3.msra.mxu1 %v356_v31 }
  0xec   : > { %632 = vmatprep.subr.mxu0 %v371_v32  ;;  %680 = vmatprep.subr.mxu1 %v371_v32 }
  0xed   : > { %306 = vadd.xlane.f32.xlu1 %v305_v29  ;;  %633 = vmatpush3.msra.mxu0 %v355_v33 }
  0xee   : > { %634 = vmatprep.subr.mxu0 %v370_v34  ;;  %696 = vmatpush3.msra.mxu1 %v355_v33 }
  0xef   : > { %635 = vmatpush3.msra.mxu0 %v354_v35  ;;  %681 = vmatprep.subr.mxu1 %v370_v34 }
  0xf0   : > { %636 = vmatprep.subr.mxu0 %v369_v36  ;;  %697 = vmatpush3.msra.mxu1 %v354_v35 }
  0xf1   : > { %637 = vmatpush3.msra.mxu0 %v353_v37  ;;  %682 = vmatprep.subr.mxu1 %v369_v36 }
  0xf2   : > { %638 = vmatprep.subr.mxu0 %v368_v38  ;;  %698 = vmatpush3.msra.mxu1 %v353_v37 }
  0xf3   : > { %639 = vmatpush3.msra.mxu0 %v352_v43  ;;  %683 = vmatprep.subr.mxu1 %v368_v38 }
  0xf4   : > { %640 = vmatprep.subr.mxu0 %v367_v44  ;;  %699 = vmatpush3.msra.mxu1 %v352_v43 }
  0xf5   : > { %641 = vmatpush3.msra.mxu0 %v351_v45  ;;  %684 = vmatprep.subr.mxu1 %v367_v44 }
  0xf6   : > { %642 = vmatprep.subr.mxu0 %v366_v46  ;;  %700 = vmatpush3.msra.mxu1 %v351_v45 }
  0xf7   : > { %643 = vmatpush3.msra.mxu0 %v350_v47  ;;  %685 = vmatprep.subr.mxu1 %v366_v46 }
  0xf8   : > { %644 = vmatprep.subr.mxu0 %v365_v48  ;;  %701 = vmatpush3.msra.mxu1 %v350_v47 }
  0xf9   : > { %645 = vmatpush3.msra.mxu0 %v349_v49  ;;  %686 = vmatprep.subr.mxu1 %v365_v48 }
  0xfa   : > { %646 = vmatprep.subr.mxu0 %v364_v50  ;;  %702 = vmatpush3.msra.mxu1 %v349_v49 }
  0xfb   : > { %647 = vmatpush3.msra.mxu0 %v348_v53  ;;  %687 = vmatprep.subr.mxu1 %v364_v50 }
  0xfc   : > { %703 = vmatpush3.msra.mxu1 %v348_v53 }
 0x166   : > { %v286_v56 = vpop.xlane.xlu0 %285 }
 0x167   : > { %v308_v57 = vmul.f32 0.00390625, %v286_v56 }
 0x169   : > { %v316_v58 = vadd.f32 1e-05, %v308_v57 }
 0x16a   : > { %v298_v59 = vpop.xlane.xlu1 %297  ;;  %v289_v60 = vpop.xlane.xlu0 %288 }
 0x16b   : > { %765 = vrsqrt.f32 %v316_v58  ;;  %v312_v61 = vmul.f32 0.00390625, %v298_v59  ;;  %v309_v62 = vmul.f32 0.00390625, %v289_v60 }
 0x16d   : > { %v320_v63 = vadd.f32 1e-05, %v312_v61  ;;  %v317_v0 = vadd.f32 1e-05, %v309_v62 }
 0x16e   : > { %v301_v3 = vpop.xlane.xlu1 %300  ;;  %v292_v6 = vpop.xlane.xlu0 %291 }
 0x16f   : > { %767 = vrsqrt.f32 %v320_v63  ;;  %v313_v7 = vmul.f32 0.00390625, %v301_v3  ;;  %v310_v8 = vmul.f32 0.00390625, %v292_v6 }
 0x170   : > { %769 = vrsqrt.f32 %v317_v0 }
 0x171   : > { %v321_v9 = vadd.f32 1e-05, %v313_v7  ;;  %v318_v10 = vadd.f32 1e-05, %v310_v8 }
 0x172   : > { %v304_v11 = vpop.xlane.xlu1 %303  ;;  %v295_v12 = vpop.xlane.xlu0 %294 }
 0x173   : > { %771 = vrsqrt.f32 %v321_v9  ;;  %v314_v13 = vmul.f32 0.00390625, %v304_v11  ;;  %v311_v14 = vmul.f32 0.00390625, %v295_v12 }
 0x174   : > { %773 = vrsqrt.f32 %v318_v10 }
 0x175   : > { %v322_v17 = vadd.f32 1e-05, %v314_v13  ;;  %v319_v24 = vadd.f32 1e-05, %v311_v14 }
 0x176   : > { %v307_v25 = vpop.xlane.xlu1 %306 }
 0x177   : > { %775 = vrsqrt.f32 %v322_v17  ;;  %v315_v18 = vmul.f32 0.00390625, %v307_v25 }
 0x178   : > { %v766_v19 = vpop.eup %765  ;;  %777 = vrsqrt.f32 %v319_v24 }
 0x179   : > { %v323_v26 = vadd.f32 1e-05, %v315_v18  ;;  %v333_v20 = vmul.f32 %v766_v19, %v1118_v40  ;;  %v332_v27 = vmul.f32 %v766_v19, %v1115_v39 }
 0x17b   : > { %779 = vrsqrt.f32 %v323_v26  ;;  %451 = vmatprep.mubr.f32.mxu0 %v333_v20 }
 0x17c   : > { %v768_v21 = vpop.eup %767  ;;  %452 = vmatmul.mubr.f32.vlgmr.msra.gmra.mxu0 %v332_v27 }
 0x17d   : > { %v770_v28 = vpop.eup %769  ;;  %v341_v29 = vmul.f32 %v768_v21, %v1138_v52  ;;  %v340_v30 = vmul.f32 %v768_v21, %v1135_v51 }
 0x17e   : > { %v335_v31 = vmul.f32 %v770_v28, %v1124_v42  ;;  %v334_v32 = vmul.f32 %v770_v28, %v1121_v41 }
 0x17f   : > { %471 = vmatprep.mubr.f32.mxu1 %v341_v29 }
 0x180   : > { %v772_v33 = vpop.eup %771  ;;  %456 = vmatprep.mubr.f32.mxu0 %v335_v31  ;;  %472 = vmatmul.mubr.f32.vlgmr.msra.gmra.mxu1 %v340_v30 }
 0x181   : > { %v774_v40 = vpop.eup %773  ;;  %457 = vmatmul.mubr.f32.gmra.mxu0 %v334_v32  ;;  %v343_v39 = vmul.f32 %v772_v33, %v1144_v55  ;;  %v342_v34 = vmul.f32 %v772_v33, %v1141_v54 }
 0x182   : > { %v337_v35 = vmul.f32 %v774_v40, %v1158_v2  ;;  %v336_v52 = vmul.f32 %v774_v40, %v1155_v1 }
 0x183   : > { %476 = vmatprep.mubr.f32.mxu1 %v343_v39 }
 0x184   : > { %v776_v51 = vpop.eup %775  ;;  %461 = vmatprep.mubr.f32.mxu0 %v337_v35  ;;  %477 = vmatmul.mubr.f32.gmra.mxu1 %v342_v34 }
 0x185   : > { %v778_v42 = vpop.eup %777  ;;  %462 = vmatmul.mubr.f32.gmra.mxu0 %v336_v52  ;;  %v345_v41 = vmul.f32 %v776_v51, %v1164_v5  ;;  %v344_v36 = vmul.f32 %v776_v51, %v1161_v4  ;;  %v608_v4 = vld [vmem:[%s1276_s2] ss:$0 sm:$0xff] }
 0x186   : > { %v339_v37 = vmul.f32 %v778_v42, %v1178_v16  ;;  %v338_v55 = vmul.f32 %v778_v42, %v1175_v15 }
 0x187   : > { %481 = vmatprep.mubr.f32.mxu1 %v345_v41 }
 0x188   : > { %v780_v54 = vpop.eup %779  ;;  %466 = vmatprep.mubr.f32.mxu0 %v339_v37  ;;  %482 = vmatmul.mubr.f32.gmra.mxu1 %v344_v36 }
 0x189   : > { %467 = vmatmul.mubr.f32.gmra.mxu0 %v338_v55  ;;  %v347_v1 = vmul.f32 %v780_v54, %v1184_v23  ;;  %v346_v2 = vmul.f32 %v780_v54, %v1181_v22 }
 0x18b   : > { %486 = vmatprep.mubr.f32.mxu1 %v347_v1 }
 0x18c   : > { %487 = vmatmul.mubr.f32.gmra.mxu1 %v346_v2 }
 0x23c   : > { %v648_v38 = vpop.f32.mrf.mxu0 }
 0x23e   : > { %v649_v5 = vpop.f32.mrf.mxu0 }
 0x23f   : > { %v650_v16 = vadd.f32 %v649_v5, %v648_v38 }
 0x240   : > { %v660_v15 = vpop.f32.mrf.mxu1 }
 0x241   : > { %v454_v43 = vadd.f32 %v650_v16, %v608_v4  ;;  %v651_v44 = vpop.f32.mrf.mxu0 }
 0x242   : > { %v661_v45 = vpop.f32.mrf.mxu1 }
 0x243   : > { %492 = vst [vmem:[%s1214_s29] sm:$0xff] %v454_v43  ;;  %v652_v22 = vpop.f32.mrf.mxu0  ;;  %v662_v23 = vadd.f32 %v661_v45, %v660_v15 }
 0x244   : > { %v653_v46 = vadd.f32 %v652_v22, %v651_v44  ;;  %v663_v47 = vpop.f32.mrf.mxu1 }
 0x245   : > { %v474_v48 = vadd.f32 %v662_v23, %v608_v4  ;;  %v654_v49 = vpop.f32.mrf.mxu0 }
 0x246   : > { %v459_v50 = vadd.f32 %v653_v46, %v608_v4  ;;  %v664_v53 = vpop.f32.mrf.mxu1 }
 0x247   : > { %496 = vst [vmem:[%s1214_s29 + $0x20] sm:$0xff] %v474_v48  ;;  %v655_v56 = vpop.f32.mrf.mxu0  ;;  %v665_v57 = vadd.f32 %v664_v53, %v663_v47 }
 0x248   : > { %493 = vst [vmem:[%s1214_s29 + $0x8] sm:$0xff] %v459_v50  ;;  %v656_v58 = vadd.f32 %v655_v56, %v654_v49  ;;  %v666_v59 = vpop.f32.mrf.mxu1 }
 0x249   : > { %v479_v60 = vadd.f32 %v665_v57, %v608_v4  ;;  %v657_v61 = vpop.f32.mrf.mxu0 }
 0x24a   : > { %v464_v62 = vadd.f32 %v656_v58, %v608_v4  ;;  %v667_v63 = vpop.f32.mrf.mxu1 }
 0x24b   : > { %497 = vst [vmem:[%s1214_s29 + $0x28] sm:$0xff] %v479_v60  ;;  %v658_v0 = vpop.f32.mrf.mxu0  ;;  %v668_v3 = vadd.f32 %v667_v63, %v666_v59 }
 0x24c   : > { %494 = vst [vmem:[%s1214_s29 + $0x10] sm:$0xff] %v464_v62  ;;  %v659_v6 = vadd.f32 %v658_v0, %v657_v61  ;;  %v669_v7 = vpop.f32.mrf.mxu1 }
 0x24d   : > { %v484_v8 = vadd.f32 %v668_v3, %v608_v4 }
 0x24e   : > { %v469_v9 = vadd.f32 %v659_v6, %v608_v4  ;;  %v670_v10 = vpop.f32.mrf.mxu1 }
 0x24f   : > { %498 = vst [vmem:[%s1214_s29 + $0x30] sm:$0xff] %v484_v8  ;;  %v671_v11 = vadd.f32 %v670_v10, %v669_v7 }
 0x250   : > { %495 = vst [vmem:[%s1214_s29 + $0x18] sm:$0xff] %v469_v9 }
 0x251   : > { %v489_v12 = vadd.f32 %v671_v11, %v608_v4 }
 0x253   : > { %499 = vst [vmem:[%s1214_s29 + $0x38] sm:$0xff] %v489_v12 }
 0x254   : > { %848 = shalt.err (!%p845_p0)
}
 0x255   : > { %s849_s21 = scalar_lea.hbm %s1230_s8, 1024  ;;  %s853_s4 = scalar_lea.hbm %s1277_s3, 2048 }
 0x256   : > { %p850_p5 = scmp.ne.s32.totalorder %s1230_s8, %s849_s21  ;;  %p854_p4 = scmp.lt.s32.totalorder %s1230_s8, %s1277_s3 }
 0x257   : > { %p855_p6 = scmp.lt.s32.totalorder %s853_s4, %s849_s21 }
 0x258   : > { %p851_p2 = pnand %p850_p5, %p1293_p11 }
 0x259   : > { %p856_p8 = por %p855_p6, %p854_p4 }
 0x25a   : > { %p852_p1 = pneg %p851_p2 }
 0x25c   : > { %p857_p3 = pnand %p856_p8, %p852_p1 }
 0x25e   : > { %860 = shalt.err (!%p857_p3)
}
 0x25f   : > { %s910_s28 = smov 128   ;;  %s911_s29 = smov 8  }
 0x260   : > { %710 = dma.vmem_to_hbm [thread:$0]  (%p1293_p11), %s1223_s17, 1024, %s1230_s8, %s501_s9, %s910_s28, %s910_s28, %s911_s29  }
 0x261 PF: > { %s529_s22 = sand.u32 1, %s891_s12   ;;  %p1294_p7 = scmp.ne.s32.totalorder %s1283_s19, 0 }
 0x262   : > { %p1295_p9 = scmp.ge.s32.totalorder %s903_s15, 2  ;;  %s530_s23 = scalar_lea.sflag [#allocation4], %s529_s22 }
 0x264   : > { %p721_p10 = pnand %p1295_p9, %p1294_p7 }
 0x266   : > { %p722_p12 = pneg %p721_p10 }
 0x268   : > { %886 = dma.done.wait (%p722_p12), %s530_s23, 1024  }
 0x269   : > { %888 = vsyncadd (%p722_p12), %s530_s23, 4294966272  ;;  %p17_p13 = scmp.ge.s32.totalorder %s986_s24, 4   ;;  %s1296_s12 = smov %s895_s13 }
 0x26a   : > { %s1297_s13 = smov %s899_s14  ;;  %s1298_s14 = smov %s1006_s5 }
 0x26b   : > { %s1299_s15 = smov %s986_s24  ;;  %19 = sbr.rel (!%p17_p13) target bundleno = 6 (0x6), region = 81 }
 0x270   :  { %535 = vsyncpa [#allocation3], 1 }
 0x271   :  { %537 = vsyncpa [#allocation3 + $0x1], 1 }
 0x272   :  { %538 = vsyncpa [#allocation6], 1 }
 0x273   :  { %539 = vsyncpa [#allocation4], 1 }
 0x274   :  { %541 = vsyncpa [#allocation4 + $0x1], 1 }

</bundles_post_ra>
